<compile_context>
chip_gen: v5e
topology: v5e:2x2
jax: 0.10.0
libtpu: 0.0.40
codegen_flags: <defaults>
</compile_context>

<pallas_src>
import jax
import jax.numpy as jnp
from jax import lax
from jax.experimental import pallas as pl
from jax.experimental.pallas import tpu as pltpu

EPS = 1e-5


def _banded_conv3x3_weights(w_oihw, W):
    """Fold the kx taps + channel contraction of a 3x3 conv into banded matrices.

    Returns (3, W*Cin, W*Cout): for each ky,
      M[ky][w_in*Cin + c, w_out*Cout + o] = w[o, c, ky, w_in - w_out + 1]
    (zero outside the 3-tap band), so that in the packed (row = b*H+h,
    lane = w*C+c) layout:  out_row(h) = sum_ky  in_row(h + ky - 1) @ M[ky]
    implements conv3x3 with padding=1 (W-padding handled by the band mask,
    H-padding by the masked rolls inside the kernel).
    """
    Cout, Cin, _, _ = w_oihw.shape
    w = w_oihw.astype(jnp.float32)
    win = jnp.arange(W)[:, None]                 # input column
    wout = jnp.arange(W)[None, :]                # output column
    kx = win - wout + 1                          # (W, W)
    valid = (kx >= 0) & (kx <= 2)
    kx_c = jnp.clip(kx, 0, 2)
    mats = []
    for ky in range(3):
        g = w[:, :, ky, :][:, :, kx_c]           # (Cout, Cin, W, W)
        g = jnp.where(valid[None, None], g, 0.0)
        m = jnp.transpose(g, (2, 1, 3, 0)).reshape(W * Cin, W * Cout)
        mats.append(m)
    return jnp.stack(mats, axis=0)               # (3, W*Cin, W*Cout)


def _make_kernel(B, H, W, C):
    WC = W * C
    BH = B * H
    inv_n = 1.0 / float(B * H * W)               # 1 / (#elements per channel)

    def _bn(z, gamma, beta):
        # Training-mode BN in the packed layout.  Row (sublane) sums give
        # per-lane sums; a log2(W)-step cyclic roll-by-C butterfly (XLU) then
        # all-reduces the W lane-groups of each channel AND broadcasts the
        # per-channel stats back to every lane.  Biased variance, eps=1e-5.
        s = jnp.sum(z, axis=0, keepdims=True)
        ss = jnp.sum(z * z, axis=0, keepdims=True)
        st = jnp.concatenate([s, ss], axis=0)            # (2, WC)
        sh = C
        while sh < WC:                                    # static unroll: log2(W) rolls
            st = st + pltpu.roll(st, sh, 1)
            sh *= 2
        mean = st[0:1, :] * inv_n
        var = st[1:2, :] * inv_n - mean * mean
        # TODO(synk): E[x^2]-E[x]^2 can cancel for large-mean activations; use a
        #             centered two-pass when generalizing beyond toy shapes.
        scale = gamma * lax.rsqrt(var + EPS)
        return z * scale + (beta - mean * scale)

    def _conv(z, m_ref, mask_up, mask_dn):
        # 3x3 conv (stride 1, pad 1): the ky taps are sublane rolls of z with a
        # per-batch H-halo mask; kx taps + channel contraction live in the
        # banded weights; all three ky planes are fused into ONE K=3*WC MXU
        # matmul, bf16 x bf16 -> f32 accumulation.
        tap_m = jnp.where(mask_up, pltpu.roll(z, 1, 0), 0.0)        # input row h-1
        tap_p = jnp.where(mask_dn, pltpu.roll(z, BH - 1, 0), 0.0)   # input row h+1
        taps = jnp.concatenate([tap_m, z, tap_p], axis=1)           # (BH, 3*WC)
        return jnp.dot(taps.astype(jnp.bfloat16), m_ref[...],
                       preferred_element_type=jnp.float32)          # (BH, WC) f32

    def kernel(x_ref, p_ref, m1_ref, m2_ref, out_ref):
        x = x_ref[...]                                   # (BH, WC) lane-dense f32
        p = p_ref[...]                                   # (8, WC): one vreg of params
        g1, b1 = p[0:1, :], p[1:2, :]
        g2, b2 = p[2:3, :], p[3:4, :]
        alpha = p[4:5, :]
        g3, b3 = p[5:6, :], p[6:7, :]

        # Per-batch H-halo masks (row r = b*H + h): zero the wrapped rolls.
        h_idx = lax.broadcasted_iota(jnp.int32, (BH, WC), 0) % H
        mask_up = h_idx != 0                             # row h-1 exists
        mask_dn = h_idx != (H - 1)                       # row h+1 exists

        out = _bn(x, g1, b1)                             # bn1
        out = _conv(out, m1_ref, mask_up, mask_dn)       # conv1
        out = _bn(out, g2, b2)                           # bn2
        out = jnp.where(out > 0, out, alpha * out)       # PReLU (per-channel)
        out = _conv(out, m2_ref, mask_up, mask_dn)       # conv2 (stride=1)
        out = _bn(out, g3, b3)                           # bn3
        out_ref[...] = out + x                           # residual, unmasked 128-lane store

    return kernel


@jax.jit
def ibasic_block(x_nchw, params):
    """x_nchw: (B, C, H, W) float32. Returns (B, C, H, W) float32."""
    B, C, H, W = x_nchw.shape
    if params["w1"].shape[0] != C or params["w2"].shape[0] != C:
        raise NotImplementedError("inplanes != planes requires the downsample branch")
    WC = W * C
    if WC % 128 != 0 or (W & (W - 1)) != 0:
        raise NotImplementedError("kernel assumes lane-dense W*C (mult of 128) and power-of-two W")
    BH = B * H

    # NCHW -> NHWC -> packed (B*H, W*C): contiguous, so the reshape is free.
    # TODO(synk): at the model level, keep activations packed across blocks to
    #             avoid these two full-tensor HBM transposes per block.
    x = jnp.transpose(x_nchw, (0, 2, 3, 1)).reshape(BH, WC).astype(jnp.float32)

    # Banded conv weights, stacked along K for the fused ky matmul; bf16 MXU operands.
    m1 = _banded_conv3x3_weights(params["w1"], W).reshape(3 * WC, WC).astype(jnp.bfloat16)
    m2 = _banded_conv3x3_weights(params["w2"], W).reshape(3 * WC, WC).astype(jnp.bfloat16)

    # All per-channel vectors packed into one (8, W*C) array = exactly one vreg.
    def packed(v):
        return jnp.tile(v.astype(jnp.float32), W)
    pvec = jnp.stack([packed(params["g1"]), packed(params["b1"]),
                      packed(params["g2"]), packed(params["b2"]),
                      packed(params["alpha"]),
                      packed(params["g3"]), packed(params["b3"]),
                      jnp.zeros((WC,), jnp.float32)], axis=0)       # (8, WC)

    vspec = pl.BlockSpec(memory_space=pltpu.MemorySpace.VMEM)
    out = pl.pallas_call(
        _make_kernel(B, H, W, C),
        out_shape=jax.ShapeDtypeStruct((BH, WC), jnp.float32),
        in_specs=[vspec] * 4,
        out_specs=vspec,
    )(x, pvec, m1, m2)

    return jnp.transpose(out.reshape(B, H, W, C), (0, 3, 1, 2))     # -> NCHW


def ibasic_block_ref(x, params):
    """Pure-JAX f32 reference (NCHW), mirrors the PyTorch forward in training mode."""
    def bn(t, g, b):
        mean = jnp.mean(t, axis=(0, 2, 3), keepdims=True)
        var = jnp.mean((t - mean) ** 2, axis=(0, 2, 3), keepdims=True)
        return (t - mean) / jnp.sqrt(var + EPS) * g.reshape(1, -1, 1, 1) + b.reshape(1, -1, 1, 1)

    def conv(t, w):
        return lax.conv_general_dilated(t, w, (1, 1), ((1, 1), (1, 1)),
                                        dimension_numbers=("NCHW", "OIHW", "NCHW"))

    out = bn(x, params["g1"], params["b1"])
    out = conv(out, params["w1"])
    out = bn(out, params["g2"], params["b2"])
    a = params["alpha"].reshape(1, -1, 1, 1)
    out = jnp.where(out > 0, out, a * out)
    out = conv(out, params["w2"])
    out = bn(out, params["g3"], params["b3"])
    return out + x


if __name__ == "__main__":
    B, C, H, W = 2, 8, 16, 16          # inplanes = planes = 8, stride = 1, W*C = 128
    key = jax.random.PRNGKey(0)
    ks = jax.random.split(key, 10)

    x = jax.random.normal(ks[0], (B, C, H, W), jnp.float32)   # NCHW, like PyTorch

    params = {
        "g1": 1.0 + 0.1 * jax.random.normal(ks[1], (C,), jnp.float32),
        "b1": 0.1 * jax.random.normal(ks[2], (C,), jnp.float32),
        "w1": 0.1 * jax.random.normal(ks[3], (C, C, 3, 3), jnp.float32),
        "g2": 1.0 + 0.1 * jax.random.normal(ks[4], (C,), jnp.float32),
        "b2": 0.1 * jax.random.normal(ks[5], (C,), jnp.float32),
        "alpha": 0.25 * jnp.ones((C,), jnp.float32),           # nn.PReLU default init
        "w2": 0.1 * jax.random.normal(ks[6], (C, C, 3, 3), jnp.float32),
        "g3": 1.0 + 0.1 * jax.random.normal(ks[7], (C,), jnp.float32),
        "b3": 0.1 * jax.random.normal(ks[8], (C,), jnp.float32),
    }

    out = jax.block_until_ready(ibasic_block(x, params))
    ref = jax.block_until_ready(ibasic_block_ref(x, params))

    assert out.shape == (B, C, H, W)
    # Conv matmuls run with bf16 MXU operands (f32 accumulation), so compare
    # against the pure-f32 reference with a correspondingly relaxed tolerance.
    assert jnp.allclose(out, ref, atol=2e-2, rtol=2e-2), "mismatch vs JAX reference"
    print("KERNEL_OK")
</pallas_src>

<mosaic_0001>
module attributes {stable_mosaic.version = 11 : i64} {
  func.func @kernel(%arg0: memref<32x128xf32, #tpu.memory_space<vmem>>, %arg1: memref<8x128xf32, #tpu.memory_space<vmem>>, %arg2: memref<384x128xbf16, #tpu.memory_space<vmem>>, %arg3: memref<384x128xbf16, #tpu.memory_space<vmem>>, %arg4: memref<32x128xf32, #tpu.memory_space<vmem>>) attributes {dimension_semantics = [], scalar_prefetch = 0 : i64, scratch_operands = 0 : i64, tpu.core_type = #tpu.core_type<tc>} {
    %c0 = arith.constant 0 : index
    %c0_0 = arith.constant 0 : index
    %0 = vector.load %arg0[%c0, %c0_0] : memref<32x128xf32, #tpu.memory_space<vmem>>, vector<32x128xf32>
    %c0_1 = arith.constant 0 : index
    %c0_2 = arith.constant 0 : index
    %1 = vector.load %arg1[%c0_1, %c0_2] : memref<8x128xf32, #tpu.memory_space<vmem>>, vector<8x128xf32>
    %2 = vector.extract_strided_slice %1 {offsets = [0, 0], sizes = [1, 128], strides = [1, 1]} : vector<8x128xf32> to vector<1x128xf32>
    %3 = vector.extract_strided_slice %1 {offsets = [1, 0], sizes = [1, 128], strides = [1, 1]} : vector<8x128xf32> to vector<1x128xf32>
    %4 = vector.extract_strided_slice %1 {offsets = [2, 0], sizes = [1, 128], strides = [1, 1]} : vector<8x128xf32> to vector<1x128xf32>
    %5 = vector.extract_strided_slice %1 {offsets = [3, 0], sizes = [1, 128], strides = [1, 1]} : vector<8x128xf32> to vector<1x128xf32>
    %6 = vector.extract_strided_slice %1 {offsets = [4, 0], sizes = [1, 128], strides = [1, 1]} : vector<8x128xf32> to vector<1x128xf32>
    %7 = vector.extract_strided_slice %1 {offsets = [5, 0], sizes = [1, 128], strides = [1, 1]} : vector<8x128xf32> to vector<1x128xf32>
    %8 = vector.extract_strided_slice %1 {offsets = [6, 0], sizes = [1, 128], strides = [1, 1]} : vector<8x128xf32> to vector<1x128xf32>
    %9 = tpu.iota {dimensions = array<i32: 0>} : vector<32x128xi32>
    %c16_i32 = arith.constant 16 : i32
    %c0_i32 = arith.constant 0 : i32
    %10 = arith.cmpi eq, %c16_i32, %c0_i32 : i32
    %c1_i32 = arith.constant 1 : i32
    %11 = arith.select %10, %c1_i32, %c16_i32 : i32
    %12 = vector.broadcast %11 : i32 to vector<32x128xi32>
    %13 = arith.remsi %9, %12 : vector<32x128xi32>
    %c0_i32_3 = arith.constant 0 : i32
    %14 = vector.broadcast %c0_i32_3 : i32 to vector<32x128xi32>
    %15 = arith.cmpi ne, %13, %14 : vector<32x128xi32>
    %c0_i32_4 = arith.constant 0 : i32
    %16 = vector.broadcast %c0_i32_4 : i32 to vector<32x128xi32>
    %17 = arith.cmpi slt, %13, %16 : vector<32x128xi32>
    %c0_i32_5 = arith.constant 0 : i32
    %18 = arith.cmpi slt, %11, %c0_i32_5 : i32
    %19 = vector.broadcast %18 : i1 to vector<32x128xi1>
    %20 = vector.broadcast %19 : vector<32x128xi1> to vector<32x128xi1>
    %21 = arith.xori %17, %20 : vector<32x128xi1>
    %22 = arith.andi %21, %15 : vector<32x128xi1>
    %23 = vector.broadcast %11 : i32 to vector<32x128xi32>
    %24 = arith.addi %13, %23 : vector<32x128xi32>
    %25 = arith.select %22, %24, %13 : vector<32x128xi1>, vector<32x128xi32>
    %c0_i32_6 = arith.constant 0 : i32
    %26 = vector.broadcast %c0_i32_6 : i32 to vector<32x128xi32>
    %27 = arith.cmpi ne, %25, %26 : vector<32x128xi32>
    %c15_i32 = arith.constant 15 : i32
    %28 = vector.broadcast %c15_i32 : i32 to vector<32x128xi32>
    %29 = arith.cmpi ne, %25, %28 : vector<32x128xi32>
    %cst = arith.constant dense<0.000000e+00> : vector<128xf32>
    %30 = vector.multi_reduction <add>, %0, %cst [0] : vector<32x128xf32> to vector<128xf32>
    %31 = vector.shape_cast %30 : vector<128xf32> to vector<1x128xf32>
    %32 = arith.mulf %0, %0 : vector<32x128xf32>
    %cst_7 = arith.constant dense<0.000000e+00> : vector<128xf32>
    %33 = vector.multi_reduction <add>, %32, %cst_7 [0] : vector<32x128xf32> to vector<128xf32>
    %34 = vector.shape_cast %33 : vector<128xf32> to vector<1x128xf32>
    %35 = tpu.concatenate %31, %34 in 0 : vector<1x128xf32>, vector<1x128xf32> -> vector<2x128xf32>
    %c8_i32 = arith.constant 8 : i32
    %36 = tpu.dynamic_rotate %35 by %c8_i32 dim 1 : vector<2x128xf32>, i32 -> vector<2x128xf32>
    %37 = arith.addf %35, %36 : vector<2x128xf32>
    %c16_i32_8 = arith.constant 16 : i32
    %38 = tpu.dynamic_rotate %37 by %c16_i32_8 dim 1 : vector<2x128xf32>, i32 -> vector<2x128xf32>
    %39 = arith.addf %37, %38 : vector<2x128xf32>
    %c32_i32 = arith.constant 32 : i32
    %40 = tpu.dynamic_rotate %39 by %c32_i32 dim 1 : vector<2x128xf32>, i32 -> vector<2x128xf32>
    %41 = arith.addf %39, %40 : vector<2x128xf32>
    %c64_i32 = arith.constant 64 : i32
    %42 = tpu.dynamic_rotate %41 by %c64_i32 dim 1 : vector<2x128xf32>, i32 -> vector<2x128xf32>
    %43 = arith.addf %41, %42 : vector<2x128xf32>
    %44 = vector.extract_strided_slice %43 {offsets = [0, 0], sizes = [1, 128], strides = [1, 1]} : vector<2x128xf32> to vector<1x128xf32>
    %cst_9 = arith.constant 0.001953125 : f32
    %45 = vector.broadcast %cst_9 : f32 to vector<1x128xf32>
    %46 = arith.mulf %44, %45 : vector<1x128xf32>
    %47 = vector.extract_strided_slice %43 {offsets = [1, 0], sizes = [1, 128], strides = [1, 1]} : vector<2x128xf32> to vector<1x128xf32>
    %cst_10 = arith.constant 0.001953125 : f32
    %48 = vector.broadcast %cst_10 : f32 to vector<1x128xf32>
    %49 = arith.mulf %47, %48 : vector<1x128xf32>
    %50 = arith.mulf %46, %46 : vector<1x128xf32>
    %51 = arith.subf %49, %50 : vector<1x128xf32>
    %cst_11 = arith.constant 9.99999974E-6 : f32
    %52 = vector.broadcast %cst_11 : f32 to vector<1x128xf32>
    %53 = arith.addf %51, %52 : vector<1x128xf32>
    %54 = math.rsqrt %53 : vector<1x128xf32>
    %55 = arith.mulf %2, %54 : vector<1x128xf32>
    %56 = vector.broadcast %55 : vector<1x128xf32> to vector<32x128xf32>
    %57 = arith.mulf %0, %56 : vector<32x128xf32>
    %58 = arith.mulf %46, %55 : vector<1x128xf32>
    %59 = arith.subf %3, %58 : vector<1x128xf32>
    %60 = vector.broadcast %59 : vector<1x128xf32> to vector<32x128xf32>
    %61 = arith.addf %57, %60 : vector<32x128xf32>
    %c1_i32_12 = arith.constant 1 : i32
    %62 = tpu.dynamic_rotate %61 by %c1_i32_12 dim 0 : vector<32x128xf32>, i32 -> vector<32x128xf32>
    %cst_13 = arith.constant 0.000000e+00 : f32
    %63 = vector.broadcast %cst_13 : f32 to vector<32x128xf32>
    %64 = arith.select %27, %62, %63 : vector<32x128xi1>, vector<32x128xf32>
    %c31_i32 = arith.constant 31 : i32
    %65 = tpu.dynamic_rotate %61 by %c31_i32 dim 0 : vector<32x128xf32>, i32 -> vector<32x128xf32>
    %cst_14 = arith.constant 0.000000e+00 : f32
    %66 = vector.broadcast %cst_14 : f32 to vector<32x128xf32>
    %67 = arith.select %29, %65, %66 : vector<32x128xi1>, vector<32x128xf32>
    %68 = tpu.concatenate %64, %61, %67 in 1 : vector<32x128xf32>, vector<32x128xf32>, vector<32x128xf32> -> vector<32x384xf32>
    %69 = arith.truncf %68 : vector<32x384xf32> to vector<32x384xbf16>
    %c0_15 = arith.constant 0 : index
    %c0_16 = arith.constant 0 : index
    %70 = vector.load %arg2[%c0_15, %c0_16] : memref<384x128xbf16, #tpu.memory_space<vmem>>, vector<384x128xbf16>
    %cst_17 = arith.constant dense<0.000000e+00> : vector<32x128xf32>
    %71 = tpu.matmul %69, %70, %cst_17 {dimension_numbers = #tpu.dot_dimension_numbers<[1], [0], [0], [1], [0, 0, 1, 1], [], []>} : vector<32x384xbf16>, vector<384x128xbf16>, vector<32x128xf32> -> vector<32x128xf32>
    %cst_18 = arith.constant dense<0.000000e+00> : vector<128xf32>
    %72 = vector.multi_reduction <add>, %71, %cst_18 [0] : vector<32x128xf32> to vector<128xf32>
    %73 = vector.shape_cast %72 : vector<128xf32> to vector<1x128xf32>
    %74 = arith.mulf %71, %71 : vector<32x128xf32>
    %cst_19 = arith.constant dense<0.000000e+00> : vector<128xf32>
    %75 = vector.multi_reduction <add>, %74, %cst_19 [0] : vector<32x128xf32> to vector<128xf32>
    %76 = vector.shape_cast %75 : vector<128xf32> to vector<1x128xf32>
    %77 = tpu.concatenate %73, %76 in 0 : vector<1x128xf32>, vector<1x128xf32> -> vector<2x128xf32>
    %c8_i32_20 = arith.constant 8 : i32
    %78 = tpu.dynamic_rotate %77 by %c8_i32_20 dim 1 : vector<2x128xf32>, i32 -> vector<2x128xf32>
    %79 = arith.addf %77, %78 : vector<2x128xf32>
    %c16_i32_21 = arith.constant 16 : i32
    %80 = tpu.dynamic_rotate %79 by %c16_i32_21 dim 1 : vector<2x128xf32>, i32 -> vector<2x128xf32>
    %81 = arith.addf %79, %80 : vector<2x128xf32>
    %c32_i32_22 = arith.constant 32 : i32
    %82 = tpu.dynamic_rotate %81 by %c32_i32_22 dim 1 : vector<2x128xf32>, i32 -> vector<2x128xf32>
    %83 = arith.addf %81, %82 : vector<2x128xf32>
    %c64_i32_23 = arith.constant 64 : i32
    %84 = tpu.dynamic_rotate %83 by %c64_i32_23 dim 1 : vector<2x128xf32>, i32 -> vector<2x128xf32>
    %85 = arith.addf %83, %84 : vector<2x128xf32>
    %86 = vector.extract_strided_slice %85 {offsets = [0, 0], sizes = [1, 128], strides = [1, 1]} : vector<2x128xf32> to vector<1x128xf32>
    %cst_24 = arith.constant 0.001953125 : f32
    %87 = vector.broadcast %cst_24 : f32 to vector<1x128xf32>
    %88 = arith.mulf %86, %87 : vector<1x128xf32>
    %89 = vector.extract_strided_slice %85 {offsets = [1, 0], sizes = [1, 128], strides = [1, 1]} : vector<2x128xf32> to vector<1x128xf32>
    %cst_25 = arith.constant 0.001953125 : f32
    %90 = vector.broadcast %cst_25 : f32 to vector<1x128xf32>
    %91 = arith.mulf %89, %90 : vector<1x128xf32>
    %92 = arith.mulf %88, %88 : vector<1x128xf32>
    %93 = arith.subf %91, %92 : vector<1x128xf32>
    %cst_26 = arith.constant 9.99999974E-6 : f32
    %94 = vector.broadcast %cst_26 : f32 to vector<1x128xf32>
    %95 = arith.addf %93, %94 : vector<1x128xf32>
    %96 = math.rsqrt %95 : vector<1x128xf32>
    %97 = arith.mulf %4, %96 : vector<1x128xf32>
    %98 = vector.broadcast %97 : vector<1x128xf32> to vector<32x128xf32>
    %99 = arith.mulf %71, %98 : vector<32x128xf32>
    %100 = arith.mulf %88, %97 : vector<1x128xf32>
    %101 = arith.subf %5, %100 : vector<1x128xf32>
    %102 = vector.broadcast %101 : vector<1x128xf32> to vector<32x128xf32>
    %103 = arith.addf %99, %102 : vector<32x128xf32>
    %cst_27 = arith.constant 0.000000e+00 : f32
    %104 = vector.broadcast %cst_27 : f32 to vector<32x128xf32>
    %105 = arith.cmpf ogt, %103, %104 : vector<32x128xf32>
    %106 = vector.broadcast %6 : vector<1x128xf32> to vector<32x128xf32>
    %107 = arith.mulf %106, %103 : vector<32x128xf32>
    %108 = arith.select %105, %103, %107 : vector<32x128xi1>, vector<32x128xf32>
    %c1_i32_28 = arith.constant 1 : i32
    %109 = tpu.dynamic_rotate %108 by %c1_i32_28 dim 0 : vector<32x128xf32>, i32 -> vector<32x128xf32>
    %cst_29 = arith.constant 0.000000e+00 : f32
    %110 = vector.broadcast %cst_29 : f32 to vector<32x128xf32>
    %111 = arith.select %27, %109, %110 : vector<32x128xi1>, vector<32x128xf32>
    %c31_i32_30 = arith.constant 31 : i32
    %112 = tpu.dynamic_rotate %108 by %c31_i32_30 dim 0 : vector<32x128xf32>, i32 -> vector<32x128xf32>
    %cst_31 = arith.constant 0.000000e+00 : f32
    %113 = vector.broadcast %cst_31 : f32 to vector<32x128xf32>
    %114 = arith.select %29, %112, %113 : vector<32x128xi1>, vector<32x128xf32>
    %115 = tpu.concatenate %111, %108, %114 in 1 : vector<32x128xf32>, vector<32x128xf32>, vector<32x128xf32> -> vector<32x384xf32>
    %116 = arith.truncf %115 : vector<32x384xf32> to vector<32x384xbf16>
    %c0_32 = arith.constant 0 : index
    %c0_33 = arith.constant 0 : index
    %117 = vector.load %arg3[%c0_32, %c0_33] : memref<384x128xbf16, #tpu.memory_space<vmem>>, vector<384x128xbf16>
    %cst_34 = arith.constant dense<0.000000e+00> : vector<32x128xf32>
    %118 = tpu.matmul %116, %117, %cst_34 {dimension_numbers = #tpu.dot_dimension_numbers<[1], [0], [0], [1], [0, 0, 1, 1], [], []>} : vector<32x384xbf16>, vector<384x128xbf16>, vector<32x128xf32> -> vector<32x128xf32>
    %cst_35 = arith.constant dense<0.000000e+00> : vector<128xf32>
    %119 = vector.multi_reduction <add>, %118, %cst_35 [0] : vector<32x128xf32> to vector<128xf32>
    %120 = vector.shape_cast %119 : vector<128xf32> to vector<1x128xf32>
    %121 = arith.mulf %118, %118 : vector<32x128xf32>
    %cst_36 = arith.constant dense<0.000000e+00> : vector<128xf32>
    %122 = vector.multi_reduction <add>, %121, %cst_36 [0] : vector<32x128xf32> to vector<128xf32>
    %123 = vector.shape_cast %122 : vector<128xf32> to vector<1x128xf32>
    %124 = tpu.concatenate %120, %123 in 0 : vector<1x128xf32>, vector<1x128xf32> -> vector<2x128xf32>
    %c8_i32_37 = arith.constant 8 : i32
    %125 = tpu.dynamic_rotate %124 by %c8_i32_37 dim 1 : vector<2x128xf32>, i32 -> vector<2x128xf32>
    %126 = arith.addf %124, %125 : vector<2x128xf32>
    %c16_i32_38 = arith.constant 16 : i32
    %127 = tpu.dynamic_rotate %126 by %c16_i32_38 dim 1 : vector<2x128xf32>, i32 -> vector<2x128xf32>
    %128 = arith.addf %126, %127 : vector<2x128xf32>
    %c32_i32_39 = arith.constant 32 : i32
    %129 = tpu.dynamic_rotate %128 by %c32_i32_39 dim 1 : vector<2x128xf32>, i32 -> vector<2x128xf32>
    %130 = arith.addf %128, %129 : vector<2x128xf32>
    %c64_i32_40 = arith.constant 64 : i32
    %131 = tpu.dynamic_rotate %130 by %c64_i32_40 dim 1 : vector<2x128xf32>, i32 -> vector<2x128xf32>
    %132 = arith.addf %130, %131 : vector<2x128xf32>
    %133 = vector.extract_strided_slice %132 {offsets = [0, 0], sizes = [1, 128], strides = [1, 1]} : vector<2x128xf32> to vector<1x128xf32>
    %cst_41 = arith.constant 0.001953125 : f32
    %134 = vector.broadcast %cst_41 : f32 to vector<1x128xf32>
    %135 = arith.mulf %133, %134 : vector<1x128xf32>
    %136 = vector.extract_strided_slice %132 {offsets = [1, 0], sizes = [1, 128], strides = [1, 1]} : vector<2x128xf32> to vector<1x128xf32>
    %cst_42 = arith.constant 0.001953125 : f32
    %137 = vector.broadcast %cst_42 : f32 to vector<1x128xf32>
    %138 = arith.mulf %136, %137 : vector<1x128xf32>
    %139 = arith.mulf %135, %135 : vector<1x128xf32>
    %140 = arith.subf %138, %139 : vector<1x128xf32>
    %cst_43 = arith.constant 9.99999974E-6 : f32
    %141 = vector.broadcast %cst_43 : f32 to vector<1x128xf32>
    %142 = arith.addf %140, %141 : vector<1x128xf32>
    %143 = math.rsqrt %142 : vector<1x128xf32>
    %144 = arith.mulf %7, %143 : vector<1x128xf32>
    %145 = vector.broadcast %144 : vector<1x128xf32> to vector<32x128xf32>
    %146 = arith.mulf %118, %145 : vector<32x128xf32>
    %147 = arith.mulf %135, %144 : vector<1x128xf32>
    %148 = arith.subf %8, %147 : vector<1x128xf32>
    %149 = vector.broadcast %148 : vector<1x128xf32> to vector<32x128xf32>
    %150 = arith.addf %146, %149 : vector<32x128xf32>
    %151 = arith.addf %150, %0 : vector<32x128xf32>
    %c0_44 = arith.constant 0 : index
    %c0_45 = arith.constant 0 : index
    %152 = vector.load %arg4[%c0_44, %c0_45] : memref<32x128xf32, #tpu.memory_space<vmem>>, vector<32x128xf32>
    tpu.vector_store %arg4[%c0_44, %c0_45], %151 {strides = array<i32>} : memref<32x128xf32, #tpu.memory_space<vmem>>, vector<32x128xf32>,
    return
  }
}

</mosaic_0001>

<bundles_post_ra>
// kernel: tile.38
= control target key start
LH: loop header
LB: loop body
LE: loop exit
PB: predicated region body
PF: predicated region fallthrough
CT: control target
= control target key end

     0   :  { %s28_s0 = inlined_call_operand.vmem [shape: f32[8], index: 0, kind: input, shape index: {}]   ;;  %s29_s1 = inlined_call_operand.vmem [shape: f32[16,8], index: 1, kind: output, shape index: {}]  }
   0x1   :  { %v4_v0 = vld [vmem:[%s28_s0] ss:$0 sm:$0xff] }
   0x2   :  { %5 = vst [vmem:[%s29_s1] sm:$0xff] %v4_v0 }
   0x3   :  { %8 = vst [vmem:[%s29_s1 + $0x8] sm:$0xff] %v4_v0 }

// kernel: tile.63
= control target key start
LH: loop header
LB: loop body
LE: loop exit
PB: predicated region body
PF: predicated region fallthrough
CT: control target
= control target key end

     0   :  { %s131_s10 = smov 120   ;;  %s132_s11 = smov 104   ;;  %vm3_vm0 = vcmask 64512   ;;  %vm9_vm1 = vcmask 1048512   ;;  %vm15_vm2 = vcmask 982912   ;;  %vm21_vm3 = vcmask 917312   ;;  %s207_s0 = inlined_call_operand.vmem [shape: f32[16,8], index: 0, kind: input, shape index: {}]   ;;  %s208_s1 = inlined_call_operand.vmem [shape: f32[1,128], index: 1, kind: output, shape index: {}]  }
   0x1   :  { %v101_v0 = vld [vmem:[%s207_s0 + $0xf] sm:$0x1]   ;;  %v103_v1 = vld [vmem:[%s207_s0 + $0xd] sm:$0x1]   ;;  %v105_v2 = vld [vmem:[%s207_s0 + $0xb] sm:$0x1]  }
   0x2   :  { %7 = vrot.lane.b32.xlu0 %v101_v0, %s131_s10  ;;  %19 = vrot.lane.b32.xlu1 %v103_v1, %s132_s11  ;;  %s133_s14 = smov 88   ;;  %v102_v3 = vld [vmem:[%s207_s0 + $0xe] sm:$0x1]   ;;  %v104_v4 = vld [vmem:[%s207_s0 + $0xc] sm:$0x1]   ;;  %s134_s19 = smov 112  }
   0x3   :  { %31 = vrot.lane.b32.xlu2 %v105_v2, %s133_s14  ;;  %s135_s20 = smov 96   ;;  %v106_v5 = vld [vmem:[%s207_s0 + $0xa] sm:$0x1]   ;;  %s136_s23 = smov 80   ;;  %v107_v6 = vld [vmem:[%s207_s0 + $0x9] sm:$0x1]  }
   0x4   :  { %v108_v7 = vld [vmem:[%s207_s0 + $0x8] sm:$0x1]   ;;  %s137_s28 = smov 72   ;;  %s138_s29 = smov 64   ;;  %v109_v8 = vld [vmem:[%s207_s0 + $0x7] sm:$0x1]  }
   0x5   :  { %s139_s3 = smov 56   ;;  %v110_v9 = vld [vmem:[%s207_s0 + $0x6] sm:$0x1]   ;;  %v111_v10 = vld [vmem:[%s207_s0 + $0x5] sm:$0x1]   ;;  %s140_s8 = smov 48  }
   0x6   :  { %s141_s9 = smov 40   ;;  %v112_v11 = vld [vmem:[%s207_s0 + $0x4] sm:$0x1]   ;;  %s142_s12 = smov 32   ;;  %v113_v12 = vld [vmem:[%s207_s0 + $0x3] sm:$0x1]  }
   0x7   :  { %v114_v13 = vld [vmem:[%s207_s0 + $0x2] sm:$0x1]   ;;  %s143_s17 = smov 24   ;;  %s144_s18 = smov 16   ;;  %v115_v14 = vld [vmem:[%s207_s0 + $0x1] sm:$0x1]  }
   0x8   :  { %s145_s21 = smov 8   ;;  %v2_v15 = vld [vmem:[%s207_s0] sm:$0x1]   ;;  %vm27_vm4 = vcmask 851712   ;;  %vm33_vm5 = vcmask 786112   ;;  %vm39_vm6 = vcmask 720512  }
   0x9   :  { %4 = vst.msk [vmem:[#allocation0] sm:$0x1] %vm3_vm0, %v2_v15   ;;  %vm45_vm7 = vcmask 654912   ;;  %vm51_vm8 = vcmask 589312   ;;  %vm57_vm9 = vcmask 523712   ;;  %vm63_vm10 = vcmask 458112  }
   0xa   :  { %13 = vrot.lane.b32.xlu0 %v102_v3, %s134_s19  ;;  %25 = vrot.lane.b32.xlu1 %v104_v4, %s135_s20  ;;  %vm69_vm11 = vcmask 392512   ;;  %vm75_vm12 = vcmask 326912   ;;  %vm81_vm13 = vcmask 261312   ;;  %vm87_vm14 = vcmask 195712  }
   0xb   :  { %37 = vrot.lane.b32.xlu2 %v106_v5, %s136_s23  ;;  %vm93_vm15 = vcmask 130112  }
  0x12   :  { %43 = vrot.lane.b32.xlu0 %v107_v6, %s137_s28  ;;  %49 = vrot.lane.b32.xlu1 %v108_v7, %s138_s29 }
  0x13   :  { %55 = vrot.lane.b32.xlu2 %v109_v8, %s139_s3 }
  0x1a   :  { %61 = vrot.lane.b32.xlu0 %v110_v9, %s140_s8  ;;  %67 = vrot.lane.b32.xlu1 %v111_v10, %s141_s9 }
  0x1b   :  { %73 = vrot.lane.b32.xlu2 %v112_v11, %s142_s12 }
  0x22   :  { %79 = vrot.lane.b32.xlu0 %v113_v12, %s143_s17  ;;  %85 = vrot.lane.b32.xlu1 %v114_v13, %s144_s18 }
  0x23   :  { %91 = vrot.lane.b32.xlu2 %v115_v14, %s145_s21 }
  0x5d   :  { %v32_v16 = vpop.permute.xlu2 %31  }
  0x65   :  { %v38_v17 = vpop.permute.xlu2 %37  }
  0x6d   :  { %v56_v18 = vpop.permute.xlu2 %55  }
  0x74   :  { %v8_v19 = vpop.permute.xlu0 %7   ;;  %v20_v20 = vpop.permute.xlu1 %19  }
  0x75   :  { %10 = vst.msk [vmem:[#allocation0] sm:$0x1] %vm9_vm1, %v8_v19   ;;  %v74_v21 = vpop.permute.xlu2 %73  }
  0x7c   :  { %v14_v22 = vpop.permute.xlu0 %13   ;;  %v26_v23 = vpop.permute.xlu1 %25  }
  0x7d   :  { %16 = vst.msk [vmem:[#allocation0] sm:$0x1] %vm15_vm2, %v14_v22   ;;  %v92_v24 = vpop.permute.xlu2 %91  }
  0x7e   :  { %22 = vst.msk [vmem:[#allocation0] sm:$0x1] %vm21_vm3, %v20_v20  }
  0x7f   :  { %28 = vst.msk [vmem:[#allocation0] sm:$0x1] %vm27_vm4, %v26_v23  }
  0x80   :  { %34 = vst.msk [vmem:[#allocation0] sm:$0x1] %vm33_vm5, %v32_v16  }
  0x81   :  { %40 = vst.msk [vmem:[#allocation0] sm:$0x1] %vm39_vm6, %v38_v17  }
  0x84   :  { %v44_v25 = vpop.permute.xlu0 %43   ;;  %v50_v26 = vpop.permute.xlu1 %49  }
  0x85   :  { %46 = vst.msk [vmem:[#allocation0] sm:$0x1] %vm45_vm7, %v44_v25  }
  0x86   :  { %52 = vst.msk [vmem:[#allocation0] sm:$0x1] %vm51_vm8, %v50_v26  }
  0x87   :  { %58 = vst.msk [vmem:[#allocation0] sm:$0x1] %vm57_vm9, %v56_v18  }
  0x8c   :  { %v62_v27 = vpop.permute.xlu0 %61   ;;  %v68_v28 = vpop.permute.xlu1 %67  }
  0x8d   :  { %64 = vst.msk [vmem:[#allocation0] sm:$0x1] %vm63_vm10, %v62_v27  }
  0x8e   :  { %70 = vst.msk [vmem:[#allocation0] sm:$0x1] %vm69_vm11, %v68_v28  }
  0x8f   :  { %76 = vst.msk [vmem:[#allocation0] sm:$0x1] %vm75_vm12, %v74_v21  }
  0x94   :  { %v80_v29 = vpop.permute.xlu0 %79   ;;  %v86_v30 = vpop.permute.xlu1 %85  }
  0x95   :  { %82 = vst.msk [vmem:[#allocation0] sm:$0x1] %vm81_vm13, %v80_v29  }
  0x96   :  { %88 = vst.msk [vmem:[#allocation0] sm:$0x1] %vm87_vm14, %v86_v30  }
  0x97   :  { %94 = vst.msk [vmem:[#allocation0] sm:$0x1] %vm93_vm15, %v92_v24  }
  0x9e   :  { %v97_v31 = vld [vmem:[#allocation0] sm:$0x1] }
  0x9f   :  { %100 = vst [vmem:[%s208_s1] sm:$0x1] %v97_v31 }

// kernel: ibasic_block.1
= control target key start
LH: loop header
LB: loop body
LE: loop exit
PB: predicated region body
PF: predicated region fallthrough
CT: control target
= control target key end

     0   :  { %vm105_vm0 = vcmask 1040384   ;;  %s1180_s23 = smov 16   ;;  %s1181_s24 = smov 32   ;;  %vm1183_vm8 = vmmov 1   ;;  %s1556_s0 = inlined_call_operand.vmem [shape: f32[32,128], index: 0, kind: input, shape index: {}]   ;;  %s1557_s2 = inlined_call_operand.vmem [shape: bf16[384,128], index: 2, kind: input, shape index: {}]   ;;  %s1558_s1 = inlined_call_operand.vmem [shape: f32[8,128], index: 1, kind: input, shape index: {}]   ;;  %s1559_s3 = inlined_call_operand.vmem [shape: bf16[384,128], index: 3, kind: input, shape index: {}]   ;;  %s1560_s4 = inlined_call_operand.vmem [shape: f32[32,128], index: 4, kind: output, shape index: {}]  }
   0x1   :  { %v1212_v0 = vld [vmem:[%s1556_s0] sm:$0xff]  ;;  %v1217_v1 = vld [vmem:[%s1556_s0 + $0x8] sm:$0xff]  ;;  %v1222_v2 = vld [vmem:[%s1556_s0 + $0x10] sm:$0xff]  ;;  %s1182_s25 = smov 64  }
   0x2   :  { %v1227_v3 = vld [vmem:[%s1556_s0 + $0x18] sm:$0xff]  ;;  %v83_v4 = vadd.f32 %v1217_v1, %v1212_v0  ;;  %v92_v5 = vmul.f32 %v1212_v0, %v1212_v0  ;;  %v93_v6 = vmul.f32 %v1217_v1, %v1217_v1  ;;  %v94_v7 = vmul.f32 %v1222_v2, %v1222_v2  ;;  %s1179_s0 = smov 8   ;;  %v1118_v36 = vld [vmem:[%s1557_s2 + $0x70] sm:$0xff]  ;;  %v1117_v39 = vld [vmem:[%s1557_s2 + $0x68] sm:$0xff] }
   0x3   :  { %v95_v9 = vmul.f32 %v1227_v3, %v1227_v3  ;;  %v1119_v33 = vld [vmem:[%s1557_s2 + $0x78] sm:$0xff]  ;;  %v1110_v37 = vld [vmem:[%s1557_s2 + $0x30] sm:$0xff]  ;;  %v1109_v40 = vld [vmem:[%s1557_s2 + $0x28] sm:$0xff] }
   0x4   :  { %v84_v8 = vadd.f32 %v83_v4, %v1222_v2  ;;  %v96_v10 = vadd.f32 %v93_v6, %v92_v5  ;;  %398 = vmatpush.bf16.msra.mxu1 %v1119_v33  ;;  %v1111_v34 = vld [vmem:[%s1557_s2 + $0x38] sm:$0xff]  ;;  %v1126_v38 = vld [vmem:[%s1557_s2 + $0xb0] sm:$0xff]  ;;  %v1125_v41 = vld [vmem:[%s1557_s2 + $0xa8] sm:$0xff] }
   0x5   :  { %v1127_v35 = vld [vmem:[%s1557_s2 + $0xb8] sm:$0xff]  ;;  %379 = vmatpush.bf16.msra.mxu0 %v1111_v34  ;;  %v1116_v42 = vld [vmem:[%s1557_s2 + $0x60] sm:$0xff]  ;;  %v1114_v50 = vld [vmem:[%s1557_s2 + $0x50] sm:$0xff] }
   0x6   :  { %v85_v11 = vadd.f32 %v84_v8, %v1227_v3  ;;  %v97_v12 = vadd.f32 %v96_v10, %v94_v7  ;;  %417 = vmatpush.bf16.msra.mxu2 %v1127_v35  ;;  %v1108_v43 = vld [vmem:[%s1557_s2 + $0x20] sm:$0xff]  ;;  %v1115_v45 = vld [vmem:[%s1557_s2 + $0x58] sm:$0xff]  ;;  %v1106_v53 = vld [vmem:[%s1557_s2 + $0x10] sm:$0xff]  ;;  %v22_v10 = vlaneseq }
   0x7   :  { %v1124_v44 = vld [vmem:[%s1557_s2 + $0xa0] sm:$0xff]  ;;  %v1107_v48 = vld [vmem:[%s1557_s2 + $0x18] sm:$0xff]  ;;  %v1122_v54 = vld [vmem:[%s1557_s2 + $0x90] sm:$0xff] }
   0x8   :  { %v86_v13 = vrot.slane %v85_v11, 4  ;;  %v98_v14 = vadd.f32 %v97_v12, %v95_v9  ;;  %399 = vmatpush.bf16.msra.mxu1 %v1118_v36  ;;  %v1123_v49 = vld [vmem:[%s1557_s2 + $0x98] sm:$0xff]  ;;  %v1113_v55 = vld [vmem:[%s1557_s2 + $0x48] sm:$0xff]  ;;  %v1112_v60 = vld [vmem:[%s1557_s2 + $0x40] sm:$0xff] }
   0x9   :  { %380 = vmatpush.bf16.msra.mxu0 %v1110_v37  ;;  %v1105_v58 = vld [vmem:[%s1557_s2 + $0x8] sm:$0xff]  ;;  %v1104_v62 = vld [vmem:[%s1557_s2] sm:$0xff] }
   0xa   :  { %v87_v15 = vadd.f32 %v86_v13, %v85_v11  ;;  %v99_v16 = vrot.slane %v98_v14, 4  ;;  %418 = vmatpush.bf16.msra.mxu2 %v1126_v38  ;;  %v1121_v59 = vld [vmem:[%s1557_s2 + $0x88] sm:$0xff]  ;;  %v1120_v63 = vld [vmem:[%s1557_s2 + $0x80] sm:$0xff] }
   0xb   :  { %v1321_v11 = vld [vmem:[%s1558_s1] sm:$0xff] }
   0xc   :  { %v88_v17 = vrot.slane %v87_v15, 2  ;;  %v100_v18 = vadd.f32 %v99_v16, %v98_v14  ;;  %400 = vmatpush.bf16.msra.mxu1 %v1117_v39  ;;  %v1323_v14 = vshrl.u32 %v22_v10, 7 }
   0xd   :  { %381 = vmatpush.bf16.msra.mxu0 %v1109_v40 }
   0xe   :  { %v89_v19 = vadd.f32 %v88_v17, %v87_v15  ;;  %v101_v20 = vrot.slane %v100_v18, 2  ;;  %419 = vmatpush.bf16.msra.mxu2 %v1125_v41  ;;  %vm159_vm4 = vcmp.lt.s32.totalorder %v1323_v14, 1  ;;  %vm172_vm7 = vcmp.lt.s32.totalorder %v1323_v14, 7 }
  0x10   :  { %v90_v21 = vrot.slane %v89_v19, 1  ;;  %v102_v22 = vadd.f32 %v101_v20, %v100_v18  ;;  %401 = vmatpush.bf16.msra.mxu1 %v1116_v42  ;;  %v24_v18 = vadd.s32 8, %v1323_v14 }
  0x11   :  { %382 = vmatpush.bf16.msra.mxu0 %v1108_v43 }
  0x12   :  { %v91_v23 = vadd.f32 %v90_v21, %v89_v19  ;;  %v103_v24 = vrot.slane %v102_v22, 1  ;;  %420 = vmatpush.bf16.msra.mxu2 %v1124_v44 }
  0x14   :  { %v104_v25 = vadd.f32 %v103_v24, %v102_v22  ;;  %402 = vmatpush.bf16.msra.mxu1 %v1115_v45  ;;  %v31_v22 = vand.u32 15, %v1323_v14 }
  0x15   :  { %383 = vmatpush.bf16.msra.mxu0 %v1107_v48  ;;  %v25_v48 = vadd.s32 16, %v1323_v14 }
  0x16   :  { %v106_v26 = vsel %vm105_vm0, %v91_v23, %v104_v25  ;;  %421 = vmatpush.bf16.msra.mxu2 %v1123_v49  ;;  %v38_v23 = vand.u32 15, %v24_v18  ;;  %vm75_vm5 = vcmp.ne.s32.totalorder %v31_v22, 0  ;;  %v26_v49 = vadd.s32 24, %v1323_v14 }
  0x17   :  { %107 = vrot.lane.b32.xlu0 %v106_v26, %s1179_s0  ;;  %vm1344_vm9 = vmpackc.low %vm1183_vm8, %vm75_vm5 }
  0x18   :  { %403 = vmatpush.bf16.msra.mxu1 %v1114_v50  ;;  %vm1334_vm6 = vcmp.ne.s32.totalorder %v38_v23, 15  ;;  %v45_v50 = vand.u32 15, %v25_v48 }
  0x19   :  { %384 = vmatpush.bf16.msra.mxu0 %v1106_v53  ;;  %vm1355_vm10 = vmpackc.low %vm1334_vm6, %vm1183_vm8 }
  0x1a   :  { %422 = vmatpush.bf16.msra.mxu2 %v1122_v54  ;;  %vm77_vm11 = vcmp.ne.s32.totalorder %v45_v50, 0 }
  0x1b   :  { %vm1374_vm13 = vmpackc.low %vm1183_vm8, %vm77_vm11 }
  0x1c   :  { %404 = vmatpush.bf16.msra.mxu1 %v1113_v55 }
  0x1d   :  { %385 = vmatpush.bf16.msra.mxu0 %v1105_v58 }
  0x1e   :  { %423 = vmatpush.bf16.msra.mxu2 %v1121_v59 }
  0x20   :  { %405 = vmatpush.bf16.msra.mxu1 %v1112_v60 }
  0x21   :  { %386 = vmatpush.bf16.msra.mxu0 %v1104_v62 }
  0x22   :  { %424 = vmatpush.bf16.msra.mxu2 %v1120_v63 }
  0x89   :  { %v108_v27 = vpop.permute.xlu0 %107 }
  0x8a   :  { %v109_v28 = vadd.f32 %v108_v27, %v106_v26 }
  0x8c   :  { %110 = vrot.lane.b32.xlu0 %v109_v28, %s1180_s23 }
  0xfe   :  { %v111_v29 = vpop.permute.xlu0 %110 }
  0xff   :  { %v112_v30 = vadd.f32 %v111_v29, %v109_v28 }
 0x101   :  { %113 = vrot.lane.b32.xlu1 %v112_v30, %s1181_s24 }
 0x173   :  { %v114_v31 = vpop.permute.xlu1 %113 }
 0x174   :  { %v115_v32 = vadd.f32 %v114_v31, %v112_v30 }
 0x176   :  { %116 = vrot.lane.b32.xlu1 %v115_v32, %s1182_s25 }
 0x1e8   :  { %v117_v46 = vpop.permute.xlu1 %116 }
 0x1e9   :  { %v118_v47 = vadd.f32 %v117_v46, %v115_v32 }
 0x1eb   :  { %v119_v51 = vmul.f32 0.001953125, %v118_v47 }
 0x1ed   :  { %v120_v52 = vmul.f32 %v119_v51, %v119_v51 }
 0x1ef   :  { %v122_v56 = vrot.slane %v120_v52, 7  ;;  %v52_v52 = vand.u32 15, %v26_v49 }
 0x1f1   :  { %v124_v57 = vsub.f32 %v119_v51, %v122_v56  ;;  %vm82_vm12 = vcmp.ne.s32.totalorder %v52_v52, 15 }
 0x1f2   :  { %vm1379_vm14 = vmpackc.low %vm82_vm12, %vm1183_vm8 }
 0x1f3   :  { %v125_v61 = vadd.f32 1e-05, %v124_v57 }
 0x1f5   :  { %1173 = vrsqrt.f32 %v125_v61  ;;  %vm132_vm2 = vweird.f32 %v125_v61 }
 0x1fb   :  { %v1174_v4 = vpop.eup %1173 }
 0x1fc   :  { %v127_v5 = vmul.f32 %v1174_v4, %v125_v61  ;;  %vm133_vm1 = vweird.f32 %v1174_v4 }
 0x1fd   :  { %vm134_vm3 = vmor %vm132_vm2, %vm133_vm1 }
 0x1fe   :  { %v128_v6 = vmul.f32 %v1174_v4, %v127_v5 }
 0x200   :  { %v129_v7 = vmul.f32 0.5, %v128_v6 }
 0x202   :  { %v130_v8 = vsub.f32 1.5, %v129_v7 }
 0x204   :  { %v131_v9 = vmul.f32 %v1174_v4, %v130_v8 }
 0x206   :  { %v135_v12 = vsel %vm134_vm3, %v1174_v4, %v131_v9 }
 0x207   :  { %v137_v13 = vrot.slane %v135_v12, 1 }
 0x209   :  { %v139_v15 = vmul.f32 %v137_v13, %v1321_v11 }
 0x20b   :  { %v145_v16 = vmul.f32 %v139_v15, %v119_v51  ;;  %v140_v17 = vperm.slane %v139_v15, 0 }
 0x20d   :  { %v147_v19 = vrot.slane %v145_v16, 7  ;;  %v141_v21 = vmul.f32 %v140_v17, %v1212_v0  ;;  %v142_v25 = vmul.f32 %v140_v17, %v1217_v1  ;;  %v144_v26 = vmul.f32 %v140_v17, %v1227_v3 }
 0x20e   :  { %v143_v27 = vmul.f32 %v140_v17, %v1222_v2 }
 0x20f   :  { %v149_v20 = vsub.f32 %v1321_v11, %v147_v19 }
 0x211   :  { %v150_v24 = vperm.slane %v149_v20, 1 }
 0x213   :  { %v151_v28 = vadd.f32 %v150_v24, %v141_v21  ;;  %v152_v29 = vadd.f32 %v150_v24, %v142_v25  ;;  %v154_v30 = vadd.f32 %v150_v24, %v144_v26  ;;  %v153_v31 = vadd.f32 %v150_v24, %v143_v27 }
 0x215   :  { %v182_v33 = vpack.c.bf16 %v152_v29, %v151_v28  ;;  %v155_v34 = vrot.slane %v151_v28, 7  ;;  %v156_v35 = vrot.slane %v152_v29, 7  ;;  %v158_v36 = vrot.slane %v154_v30, 7 }
 0x216   :  { %v168_v37 = vrot.slane %v151_v28, 1  ;;  %v169_v38 = vrot.slane %v152_v29, 1  ;;  %v170_v39 = vrot.slane %v153_v31, 1  ;;  %v157_v51 = vrot.slane %v153_v31, 7 }
 0x217   :  { %406 = vmatmul.bf16.vlgmr.msra.gmra.mxu1 %v182_v33  ;;  %v162_v40 = vsel %vm159_vm4, %v155_v34, %v156_v35  ;;  %v163_v41 = vsel %vm159_vm4, %v158_v36, %v155_v34  ;;  %v171_v53 = vrot.slane %v154_v30, 1  ;;  %v185_v54 = vpack.c.bf16 %v154_v30, %v153_v31 }
 0x218   :  { %v985_v43 = vpack.c.bf16 %v162_v40, %v163_v41  ;;  %v174_v44 = vsel %vm172_vm7, %v169_v38, %v170_v39  ;;  %v175_v45 = vsel %vm172_vm7, %v168_v37, %v169_v38  ;;  %v160_v55 = vsel %vm159_vm4, %v157_v51, %v158_v36 }
 0x219   :  { %v991_v47 = vpack.c.bf16 %v174_v44, %v175_v45  ;;  %v161_v56 = vsel %vm159_vm4, %v156_v35, %v157_v51  ;;  %v173_v57 = vsel %vm172_vm7, %v170_v39, %v171_v53  ;;  %v176_v58 = vsel %vm172_vm7, %v171_v53, %v168_v37 }
 0x21a   :  { %986 = vmatmul.msk.bf16.vlgmr.msra.gmra.mxu0 %vm1344_vm9, %v985_v43  ;;  %v988_v60 = vpack.c.bf16 %v160_v55, %v161_v56  ;;  %v994_v62 = vpack.c.bf16 %v176_v58, %v173_v57  ;;  %v1143_v56 = vld [vmem:[%s1559_s3 + $0x78] sm:$0xff] }
 0x21b   :  { %992 = vmatmul.msk.bf16.vlgmr.msra.gmra.mxu2 %vm1355_vm10, %v991_v47  ;;  %764 = vmatpush.bf16.msrb.mxu0 %v1143_v56  ;;  %v1135_v57 = vld [vmem:[%s1559_s3 + $0x38] sm:$0xff] }
 0x21c   :  { %1152 = vmatpush.bf16.msrb.mxu2 %v1143_v56  ;;  %v1151_v58 = vld [vmem:[%s1559_s3 + $0xb8] sm:$0xff]  ;;  %745 = vmatpush.bf16.msra.mxu3 %v1135_v57 }
 0x21d   :  { %783 = vmatpush.bf16.msrb.mxu1 %v1151_v58 }
 0x227   :  { %411 = vmatmul.bf16.gmra.mxu1 %v185_v54 }
 0x22a   :  { %989 = vmatmul.msk.bf16.gmra.mxu0 %vm1374_vm13, %v988_v60  ;;  %v1142_v60 = vld [vmem:[%s1559_s3 + $0x70] sm:$0xff] }
 0x22b   :  { %995 = vmatmul.msk.bf16.gmra.mxu2 %vm1379_vm14, %v994_v62  ;;  %765 = vmatpush.bf16.msrb.mxu0 %v1142_v60  ;;  %v1134_v62 = vld [vmem:[%s1559_s3 + $0x30] sm:$0xff] }
 0x22c   :  { %1153 = vmatpush.bf16.msrb.mxu2 %v1142_v60  ;;  %746 = vmatpush.bf16.msra.mxu3 %v1134_v62 }
 0x294   :  { %v407_v63 = vpop.f32.mrf.mxu1 }
 0x297   :  { %v388_v4 = vpop.f32.mrf.mxu0 }
 0x298   :  { %v408_v15 = vadd.f32 %v407_v63, %v388_v4  ;;  %v1150_v63 = vld [vmem:[%s1559_s3 + $0xb0] sm:$0xff]  ;;  %v1141_v4 = vld [vmem:[%s1559_s3 + $0x68] sm:$0xff] }
 0x299   :  { %784 = vmatpush.bf16.msrb.mxu1 %v1150_v63  ;;  %766 = vmatpush.bf16.msrb.mxu0 %v1141_v4 }
 0x29a   :  { %1154 = vmatpush.bf16.msrb.mxu2 %v1141_v4 }
 0x29c   :  { %v409_v7 = vpop.f32.mrf.mxu1 }
 0x29e   :  { %v426_v5 = vpop.f32.mrf.mxu2 }
 0x29f   :  { %v390_v6 = vpop.f32.mrf.mxu0  ;;  %v1389_v18 = vadd.f32 %v426_v5, %v408_v15 }
 0x2a0   :  { %v410_v12 = vadd.f32 %v409_v7, %v390_v6  ;;  %v1133_v6 = vld [vmem:[%s1559_s3 + $0x28] sm:$0xff] }
 0x2a1   :  { %v445_v23 = vmul.f32 %v1389_v18, %v1389_v18  ;;  %v1149_v7 = vld [vmem:[%s1559_s3 + $0xa8] sm:$0xff]  ;;  %747 = vmatpush.bf16.msra.mxu3 %v1133_v6 }
 0x2a2   :  { %785 = vmatpush.bf16.msrb.mxu1 %v1149_v7 }
 0x2a4   :  { %v412_v10 = vpop.f32.mrf.mxu1 }
 0x2a6   :  { %v428_v8 = vpop.f32.mrf.mxu2 }
 0x2a7   :  { %v393_v9 = vpop.f32.mrf.mxu0  ;;  %v1387_v16 = vadd.f32 %v428_v8, %v410_v12  ;;  %v1132_v12 = vld [vmem:[%s1559_s3 + $0x20] sm:$0xff] }
 0x2a8   :  { %v413_v17 = vadd.f32 %v412_v10, %v393_v9  ;;  %v1140_v9 = vld [vmem:[%s1559_s3 + $0x60] sm:$0xff]  ;;  %748 = vmatpush.bf16.msra.mxu3 %v1132_v12 }
 0x2a9   :  { %v446_v21 = vmul.f32 %v1387_v16, %v1387_v16  ;;  %v436_v24 = vadd.f32 %v1387_v16, %v1389_v18  ;;  %767 = vmatpush.bf16.msrb.mxu0 %v1140_v9  ;;  %1155 = vmatpush.bf16.msrb.mxu2 %v1140_v9 }
 0x2ab   :  { %v449_v28 = vadd.f32 %v446_v21, %v445_v23  ;;  %v1131_v21 = vld [vmem:[%s1559_s3 + $0x18] sm:$0xff] }
 0x2ac   :  { %v414_v22 = vpop.f32.mrf.mxu1  ;;  %749 = vmatpush.bf16.msra.mxu3 %v1131_v21 }
 0x2ae   :  { %v431_v13 = vpop.f32.mrf.mxu2 }
 0x2af   :  { %v1391_v19 = vadd.f32 %v431_v13, %v413_v17  ;;  %v395_v20 = vpop.f32.mrf.mxu0  ;;  %v1148_v13 = vld [vmem:[%s1559_s3 + $0xa0] sm:$0xff]  ;;  %v1139_v17 = vld [vmem:[%s1559_s3 + $0x58] sm:$0xff] }
 0x2b0   :  { %v415_v26 = vadd.f32 %v414_v22, %v395_v20  ;;  %786 = vmatpush.bf16.msrb.mxu1 %v1148_v13  ;;  %768 = vmatpush.bf16.msrb.mxu0 %v1139_v17  ;;  %v1147_v22 = vld [vmem:[%s1559_s3 + $0x98] sm:$0xff] }
 0x2b1   :  { %v447_v25 = vmul.f32 %v1391_v19, %v1391_v19  ;;  %v437_v29 = vadd.f32 %v436_v24, %v1391_v19  ;;  %1156 = vmatpush.bf16.msrb.mxu2 %v1139_v17  ;;  %v1138_v24 = vld [vmem:[%s1559_s3 + $0x50] sm:$0xff] }
 0x2b3   :  { %v450_v31 = vadd.f32 %v449_v28, %v447_v25  ;;  %v1137_v28 = vld [vmem:[%s1559_s3 + $0x48] sm:$0xff] }
 0x2b4   :  { %787 = vmatpush.bf16.msrb.mxu1 %v1147_v22  ;;  %769 = vmatpush.bf16.msrb.mxu0 %v1138_v24 }
 0x2b5   :  { %1157 = vmatpush.bf16.msrb.mxu2 %v1138_v24 }
 0x2b6   :  { %v433_v27 = vpop.f32.mrf.mxu2 }
 0x2b7   :  { %v1402_v30 = vadd.f32 %v433_v27, %v415_v26  ;;  %v1130_v26 = vld [vmem:[%s1559_s3 + $0x10] sm:$0xff] }
 0x2b8   :  { %v1146_v27 = vld [vmem:[%s1559_s3 + $0x90] sm:$0xff]  ;;  %750 = vmatpush.bf16.msra.mxu3 %v1130_v26  ;;  %770 = vmatpush.bf16.msrb.mxu0 %v1137_v28 }
 0x2b9   :  { %v438_v32 = vadd.f32 %v437_v29, %v1402_v30  ;;  %v448_v33 = vmul.f32 %v1402_v30, %v1402_v30  ;;  %788 = vmatpush.bf16.msrb.mxu1 %v1146_v27  ;;  %v1129_v29 = vld [vmem:[%s1559_s3 + $0x8] sm:$0xff]  ;;  %1158 = vmatpush.bf16.msrb.mxu2 %v1137_v28 }
 0x2bb   :  { %v439_v34 = vrot.slane %v438_v32, 4  ;;  %v451_v35 = vadd.f32 %v450_v31, %v448_v33  ;;  %v1145_v31 = vld [vmem:[%s1559_s3 + $0x88] sm:$0xff]  ;;  %v1128_v33 = vld [vmem:[%s1559_s3] sm:$0xff] }
 0x2bc   :  { %751 = vmatpush.bf16.msra.mxu3 %v1129_v29 }
 0x2bd   :  { %v440_v36 = vadd.f32 %v439_v34, %v438_v32  ;;  %v452_v37 = vrot.slane %v451_v35, 4  ;;  %v1136_v32 = vld [vmem:[%s1559_s3 + $0x40] sm:$0xff]  ;;  %789 = vmatpush.bf16.msrb.mxu1 %v1145_v31 }
 0x2be   :  { %771 = vmatpush.bf16.msrb.mxu0 %v1136_v32  ;;  %1159 = vmatpush.bf16.msrb.mxu2 %v1136_v32 }
 0x2bf   :  { %v441_v38 = vrot.slane %v440_v36, 2  ;;  %v453_v39 = vadd.f32 %v452_v37, %v451_v35 }
 0x2c0   :  { %752 = vmatpush.bf16.msra.mxu3 %v1128_v33 }
 0x2c1   :  { %v442_v40 = vadd.f32 %v441_v38, %v440_v36  ;;  %v454_v41 = vrot.slane %v453_v39, 2  ;;  %v1144_v36 = vld [vmem:[%s1559_s3 + $0x80] sm:$0xff] }
 0x2c2   :  { %790 = vmatpush.bf16.msrb.mxu1 %v1144_v36 }
 0x2c3   :  { %v443_v43 = vrot.slane %v442_v40, 1  ;;  %v455_v44 = vadd.f32 %v454_v41, %v453_v39 }
 0x2c4   :  { %1160 = vmatpush.bf16.msrb.mxu3 %v1151_v58 }
 0x2c5   :  { %v456_v45 = vrot.slane %v455_v44, 1  ;;  %v444_v47 = vadd.f32 %v443_v43, %v442_v40 }
 0x2c7   :  { %v457_v48 = vadd.f32 %v456_v45, %v455_v44 }
 0x2c8   :  { %1161 = vmatpush.bf16.msrb.mxu3 %v1150_v63 }
 0x2c9   :  { %v458_v49 = vsel %vm105_vm0, %v444_v47, %v457_v48 }
 0x2ca   :  { %459 = vrot.lane.b32.xlu2 %v458_v49, %s1179_s0 }
 0x2cc   :  { %1162 = vmatpush.bf16.msrb.mxu3 %v1149_v7 }
 0x2d0   :  { %1163 = vmatpush.bf16.msrb.mxu3 %v1148_v13 }
 0x2d4   :  { %1164 = vmatpush.bf16.msrb.mxu3 %v1147_v22 }
 0x2d8   :  { %1165 = vmatpush.bf16.msrb.mxu3 %v1146_v27 }
 0x2dc   :  { %1166 = vmatpush.bf16.msrb.mxu3 %v1145_v31 }
 0x2e0   :  { %1167 = vmatpush.bf16.msrb.mxu3 %v1144_v36 }
 0x324   :  { %v460_v50 = vpop.permute.xlu2 %459 }
 0x325   :  { %v461_v51 = vadd.f32 %v460_v50, %v458_v49 }
 0x327   :  { %462 = vrot.lane.b32.xlu2 %v461_v51, %s1180_s23 }
 0x381   :  { %v463_v52 = vpop.permute.xlu2 %462 }
 0x382   :  { %v464_v53 = vadd.f32 %v463_v52, %v461_v51  ;;  %v514_v52 = vperm.slane %v1321_v11, 4 }
 0x384   :  { %465 = vrot.lane.b32.xlu0 %v464_v53, %s1181_s24 }
 0x3f6   :  { %v466_v54 = vpop.permute.xlu0 %465 }
 0x3f7   :  { %v467_v55 = vadd.f32 %v466_v54, %v464_v53 }
 0x3f9   :  { %468 = vrot.lane.b32.xlu1 %v467_v55, %s1182_s25 }
 0x46b   :  { %v469_v5 = vpop.permute.xlu1 %468 }
 0x46c   :  { %v470_v8 = vadd.f32 %v469_v5, %v467_v55 }
 0x46e   :  { %v471_v10 = vmul.f32 0.001953125, %v470_v8 }
 0x470   :  { %v472_v15 = vmul.f32 %v471_v10, %v471_v10 }
 0x472   :  { %v474_v20 = vrot.slane %v472_v15, 7 }
 0x474   :  { %v476_v23 = vsub.f32 %v471_v10, %v474_v20 }
 0x476   :  { %v477_v25 = vadd.f32 1e-05, %v476_v23 }
 0x478   :  { %1175 = vrsqrt.f32 %v477_v25  ;;  %vm484_vm1 = vweird.f32 %v477_v25 }
 0x47e   :  { %v1176_v34 = vpop.eup %1175 }
 0x47f   :  { %v479_v35 = vmul.f32 %v1176_v34, %v477_v25  ;;  %vm485_vm15 = vweird.f32 %v1176_v34 }
 0x480   :  { %vm486_vm2 = vmor %vm484_vm1, %vm485_vm15 }
 0x481   :  { %v480_v37 = vmul.f32 %v1176_v34, %v479_v35 }
 0x483   :  { %v481_v38 = vmul.f32 0.5, %v480_v37 }
 0x485   :  { %v482_v39 = vsub.f32 1.5, %v481_v38 }
 0x487   :  { %v483_v40 = vmul.f32 %v1176_v34, %v482_v39 }
 0x489   :  { %v487_v41 = vsel %vm486_vm2, %v1176_v34, %v483_v40 }
 0x48a   :  { %v489_v43 = vrot.slane %v487_v41, 7 }
 0x48c   :  { %v491_v44 = vmul.f32 %v489_v43, %v1321_v11 }
 0x48e   :  { %v498_v45 = vrot.slane %v491_v44, 2  ;;  %v492_v48 = vperm.slane %v491_v44, 2 }
 0x490   :  { %v500_v47 = vmul.f32 %v498_v45, %v471_v10  ;;  %v493_v51 = vmul.f32 %v492_v48, %v1389_v18  ;;  %v494_v54 = vmul.f32 %v492_v48, %v1387_v16  ;;  %v495_v55 = vmul.f32 %v492_v48, %v1391_v19 }
 0x491   :  { %v496_v56 = vmul.f32 %v492_v48, %v1402_v30 }
 0x492   :  { %v502_v49 = vrot.slane %v500_v47, 5 }
 0x494   :  { %v504_v50 = vsub.f32 %v1321_v11, %v502_v49 }
 0x496   :  { %v505_v53 = vperm.slane %v504_v50, 3 }
 0x498   :  { %v506_v57 = vadd.f32 %v505_v53, %v493_v51  ;;  %v507_v58 = vadd.f32 %v505_v53, %v494_v54  ;;  %v508_v60 = vadd.f32 %v505_v53, %v495_v55  ;;  %v509_v62 = vadd.f32 %v505_v53, %v496_v56 }
 0x49a   :  { %vm510_vm3 = vcmp.gt.f32.partialorder %v506_v57, 0.0  ;;  %vm511_vm5 = vcmp.gt.f32.partialorder %v507_v58, 0.0  ;;  %v515_v63 = vmul.f32 %v514_v52, %v506_v57  ;;  %v516_v4 = vmul.f32 %v514_v52, %v507_v58 }
 0x49b   :  { %vm512_vm6 = vcmp.gt.f32.partialorder %v508_v60, 0.0  ;;  %vm513_vm8 = vcmp.gt.f32.partialorder %v509_v62, 0.0  ;;  %v517_v18 = vmul.f32 %v514_v52, %v508_v60  ;;  %v518_v5 = vmul.f32 %v514_v52, %v509_v62 }
 0x49c   :  { %v519_v6 = vsel %vm510_vm3, %v506_v57, %v515_v63  ;;  %v520_v16 = vsel %vm511_vm5, %v507_v58, %v516_v4 }
 0x49d   :  { %v523_v7 = vrot.slane %v519_v6, 7  ;;  %v524_v19 = vrot.slane %v520_v16, 7  ;;  %v535_v8 = vrot.slane %v519_v6, 1  ;;  %v536_v30 = vrot.slane %v520_v16, 1 }
 0x49e   :  { %v548_v9 = vpack.c.bf16 %v520_v16, %v519_v6  ;;  %v521_v10 = vsel %vm512_vm6, %v508_v60, %v517_v18  ;;  %v522_v12 = vsel %vm513_vm8, %v509_v62, %v518_v5 }
 0x49f   :  { %v526_v13 = vrot.slane %v522_v12, 7  ;;  %v537_v15 = vrot.slane %v521_v10, 1  ;;  %v551_v17 = vpack.c.bf16 %v522_v12, %v521_v10  ;;  %v529_v20 = vsel %vm159_vm4, %v523_v7, %v524_v19 }
 0x4a0   :  { %772 = vmatmul.bf16.vlgmr.msrb.gmra.mxu0 %v548_v9  ;;  %v541_v21 = vsel %vm172_vm7, %v535_v8, %v536_v30  ;;  %v525_v26 = vrot.slane %v521_v10, 7  ;;  %v538_v31 = vrot.slane %v522_v12, 1 }
 0x4a1   :  { %v530_v22 = vsel %vm159_vm4, %v526_v13, %v523_v7  ;;  %v540_v23 = vsel %vm172_vm7, %v536_v30, %v537_v15  ;;  %777 = vmatmul.bf16.vlgmr.msrb.gmra.mxu2 %v551_v17 }
 0x4a2   :  { %v1093_v24 = vpack.c.bf16 %v529_v20, %v530_v22  ;;  %v1099_v25 = vpack.c.bf16 %v540_v23, %v541_v21  ;;  %v527_v27 = vsel %vm159_vm4, %v525_v26, %v526_v13  ;;  %v528_v28 = vsel %vm159_vm4, %v524_v19, %v525_v26 }
 0x4a3   :  { %v1096_v29 = vpack.c.bf16 %v527_v27, %v528_v28  ;;  %v539_v32 = vsel %vm172_vm7, %v537_v15, %v538_v31  ;;  %v542_v42 = vsel %vm172_vm7, %v538_v31, %v535_v8 }
 0x4a4   :  { %1094 = vmatmul.msk.bf16.vlgmr.msra.gmra.mxu3 %vm1344_vm9, %v1093_v24  ;;  %1100 = vmatmul.msk.bf16.vlgmr.msrb.gmra.mxu1 %vm1355_vm10, %v1099_v25  ;;  %v1102_v46 = vpack.c.bf16 %v542_v42, %v539_v32 }
 0x4b4   :  { %1097 = vmatmul.msk.bf16.gmra.mxu3 %vm1374_vm13, %v1096_v29 }
 0x4c4   :  { %1103 = vmatmul.msk.bf16.vlgmr.msrb.gmra.mxu3 %vm1379_vm14, %v1102_v46 }
 0x51d   :  { %v773_v36 = vpop.f32.mrf.mxu0 }
 0x521   :  { %v792_v37 = vpop.f32.mrf.mxu1 }
 0x524   :  { %v778_v39 = vpop.f32.mrf.mxu2 }
 0x525   :  { %v775_v59 = vpop.f32.mrf.mxu0 }
 0x527   :  { %v754_v33 = vpop.f32.mrf.mxu3 }
 0x528   :  { %v774_v41 = vadd.f32 %v773_v36, %v754_v33 }
 0x529   :  { %v794_v43 = vpop.f32.mrf.mxu1 }
 0x52a   :  { %v1517_v47 = vadd.f32 %v792_v37, %v774_v41 }
 0x52c   :  { %v780_v49 = vpop.f32.mrf.mxu2  ;;  %v811_v50 = vmul.f32 %v1517_v47, %v1517_v47 }
 0x52f   :  { %v756_v34 = vpop.f32.mrf.mxu3 }
 0x530   :  { %v776_v40 = vadd.f32 %v775_v59, %v756_v34 }
 0x532   :  { %v1515_v45 = vadd.f32 %v794_v43, %v776_v40 }
 0x534   :  { %v812_v61 = vmul.f32 %v1515_v45, %v1515_v45  ;;  %v802_v52 = vadd.f32 %v1515_v45, %v1517_v47 }
 0x536   :  { %v815_v56 = vadd.f32 %v812_v61, %v811_v50 }
 0x537   :  { %v759_v35 = vpop.f32.mrf.mxu3 }
 0x538   :  { %v779_v14 = vadd.f32 %v778_v39, %v759_v35 }
 0x53f   :  { %v761_v38 = vpop.f32.mrf.mxu3 }
 0x540   :  { %v781_v51 = vadd.f32 %v780_v49, %v761_v38 }
 0x547   :  { %v797_v44 = vpop.f32.mrf.mxu3 }
 0x548   :  { %v1519_v48 = vadd.f32 %v797_v44, %v779_v14 }
 0x54a   :  { %v813_v53 = vmul.f32 %v1519_v48, %v1519_v48  ;;  %v803_v55 = vadd.f32 %v802_v52, %v1519_v48 }
 0x54c   :  { %v816_v58 = vadd.f32 %v815_v56, %v813_v53 }
 0x54f   :  { %v799_v54 = vpop.f32.mrf.mxu3 }
 0x550   :  { %v800_v57 = vadd.f32 %v799_v54, %v781_v51 }
 0x552   :  { %v804_v60 = vadd.f32 %v803_v55, %v800_v57  ;;  %v814_v62 = vmul.f32 %v800_v57, %v800_v57 }
 0x554   :  { %v805_v63 = vrot.slane %v804_v60, 4  ;;  %v817_v4 = vadd.f32 %v816_v58, %v814_v62 }
 0x556   :  { %v806_v18 = vadd.f32 %v805_v63, %v804_v60  ;;  %v818_v5 = vrot.slane %v817_v4, 4 }
 0x558   :  { %v807_v6 = vrot.slane %v806_v18, 2  ;;  %v819_v16 = vadd.f32 %v818_v5, %v817_v4 }
 0x55a   :  { %v808_v7 = vadd.f32 %v807_v6, %v806_v18  ;;  %v820_v19 = vrot.slane %v819_v16, 2 }
 0x55c   :  { %v809_v8 = vrot.slane %v808_v7, 1  ;;  %v821_v30 = vadd.f32 %v820_v19, %v819_v16 }
 0x55e   :  { %v822_v9 = vrot.slane %v821_v30, 1  ;;  %v810_v10 = vadd.f32 %v809_v8, %v808_v7 }
 0x560   :  { %v823_v12 = vadd.f32 %v822_v9, %v821_v30 }
 0x562   :  { %v824_v13 = vsel %vm105_vm0, %v810_v10, %v823_v12 }
 0x563   :  { %825 = vrot.lane.b32.xlu2 %v824_v13, %s1179_s0 }
 0x5bd   :  { %v826_v15 = vpop.permute.xlu2 %825 }
 0x5be   :  { %v827_v17 = vadd.f32 %v826_v15, %v824_v13 }
 0x5c0   :  { %828 = vrot.lane.b32.xlu0 %v827_v17, %s1180_s23 }
 0x632   :  { %v829_v20 = vpop.permute.xlu0 %828 }
 0x633   :  { %v830_v21 = vadd.f32 %v829_v20, %v827_v17 }
 0x635   :  { %831 = vrot.lane.b32.xlu1 %v830_v21, %s1181_s24 }
 0x6a7   :  { %v832_v22 = vpop.permute.xlu1 %831 }
 0x6a8   :  { %v833_v23 = vadd.f32 %v832_v22, %v830_v21 }
 0x6aa   :  { %834 = vrot.lane.b32.xlu2 %v833_v23, %s1182_s25 }
 0x704   :  { %v835_v24 = vpop.permute.xlu2 %834 }
 0x705   :  { %v836_v25 = vadd.f32 %v835_v24, %v833_v23 }
 0x707   :  { %v837_v26 = vmul.f32 0.001953125, %v836_v25 }
 0x709   :  { %v838_v27 = vmul.f32 %v837_v26, %v837_v26 }
 0x70b   :  { %v840_v28 = vrot.slane %v838_v27, 7 }
 0x70d   :  { %v842_v29 = vsub.f32 %v837_v26, %v840_v28 }
 0x70f   :  { %v843_v31 = vadd.f32 1e-05, %v842_v29 }
 0x711   :  { %1177 = vrsqrt.f32 %v843_v31  ;;  %vm850_vm4 = vweird.f32 %v843_v31 }
 0x717   :  { %v1178_v32 = vpop.eup %1177 }
 0x718   :  { %v845_v42 = vmul.f32 %v1178_v32, %v843_v31  ;;  %vm851_vm0 = vweird.f32 %v1178_v32 }
 0x719   :  { %vm852_vm7 = vmor %vm850_vm4, %vm851_vm0 }
 0x71a   :  { %v846_v46 = vmul.f32 %v1178_v32, %v845_v42 }
 0x71c   :  { %v847_v33 = vmul.f32 0.5, %v846_v46 }
 0x71e   :  { %v848_v34 = vsub.f32 1.5, %v847_v33 }
 0x720   :  { %v849_v35 = vmul.f32 %v1178_v32, %v848_v34 }
 0x722   :  { %v853_v36 = vsel %vm852_vm7, %v1178_v32, %v849_v35 }
 0x723   :  { %v855_v37 = vrot.slane %v853_v36, 4 }
 0x725   :  { %v857_v38 = vmul.f32 %v855_v37, %v1321_v11 }
 0x727   :  { %v864_v39 = vrot.slane %v857_v38, 5  ;;  %v858_v40 = vperm.slane %v857_v38, 5 }
 0x729   :  { %v866_v59 = vmul.f32 %v864_v39, %v837_v26  ;;  %v859_v44 = vmul.f32 %v858_v40, %v1517_v47  ;;  %v860_v14 = vmul.f32 %v858_v40, %v1515_v45  ;;  %v861_v61 = vmul.f32 %v858_v40, %v1519_v48 }
 0x72a   :  { %v862_v49 = vmul.f32 %v858_v40, %v800_v57 }
 0x72b   :  { %v868_v41 = vrot.slane %v866_v59, 2 }
 0x72d   :  { %v870_v43 = vsub.f32 %v1321_v11, %v868_v41 }
 0x72f   :  { %v871_v50 = vperm.slane %v870_v43, 6 }
 0x731   :  { %v872_v51 = vadd.f32 %v871_v50, %v859_v44  ;;  %v873_v52 = vadd.f32 %v871_v50, %v860_v14  ;;  %v874_v53 = vadd.f32 %v871_v50, %v861_v61  ;;  %v875_v54 = vadd.f32 %v871_v50, %v862_v49 }
 0x733   :  { %v876_v55 = vadd.f32 %v872_v51, %v1212_v0  ;;  %v877_v56 = vadd.f32 %v873_v52, %v1217_v1  ;;  %v878_v58 = vadd.f32 %v874_v53, %v1222_v2  ;;  %v879_v11 = vadd.f32 %v875_v54, %v1227_v3 }
 0x735   :  { %880 = vst [vmem:[%s1560_s4] sm:$0xff] %v876_v55 }
 0x736   :  { %881 = vst [vmem:[%s1560_s4 + $0x8] sm:$0xff] %v877_v56 }
 0x737   :  { %882 = vst [vmem:[%s1560_s4 + $0x10] sm:$0xff] %v878_v58 }
 0x738   :  { %883 = vst [vmem:[%s1560_s4 + $0x18] sm:$0xff] %v879_v11 }

</bundles_post_ra>
